<compile_context>
chip_gen: v6e
topology: v6e:2x2x1
jax: 0.10.0
libtpu: 0.0.40
codegen_flags: <defaults>
</compile_context>

<pallas_src>
import functools

import jax
import jax.numpy as jnp
from jax import lax
from jax.experimental import pallas as pl
from jax.experimental.pallas import tpu as pltpu


def _round_up(x, m):
    return ((x + m - 1) // m) * m


def _nce_kernel(y_pred_ref, y_train_ref, sol_ref, cache_ref, out_ref,
                acc_ref, w_ref, *, variant, max_ind, tp, p_actual):
    i = pl.program_id(0)
    n = pl.num_programs(0)

    is_sum = variant in (1, 2, 3)
    is_relu = variant in (4, 5, 6, 10)
    is_max = variant in (7, 8, 9)

    # --- one-time init: weight vector w and the scalar accumulator ----------
    @pl.when(i == 0)
    def _init():
        yp = y_pred_ref[...].astype(jnp.float32)   # (1, Dp)
        yt = y_train_ref[...].astype(jnp.float32)  # (1, Dp)
        if variant in (1, 4, 7):
            w_ref[...] = yp
        elif variant in (2, 5, 8):
            w_ref[...] = yp - yt
        elif variant in (3, 6, 9):
            w_ref[...] = 2.0 * yp - yt
        else:  # variant == 10
            w_ref[...] = yt - yp
        acc_ref[0] = jnp.float32(-jnp.inf) if is_max else jnp.float32(0.0)

    w = w_ref[...]                                  # (1, Dp) f32 (VMEM resident)
    sol = sol_ref[...].astype(jnp.float32)          # (1, Dp)
    cache = cache_ref[...].astype(jnp.float32)      # (TP, Dp)

    # row-validity mask: handles P padded up to a multiple of TP
    row_ids = i * tp + lax.broadcasted_iota(jnp.int32, (tp, 1), 0)
    valid = row_ids < p_actual                      # (TP, 1) bool
    valid_f = valid.astype(jnp.float32)

    if is_sum:
        # sum_p sum_d max_ind*(cache_pd - sol_d)*w_d
        #   = max_ind * sum_d w_d * (colsum_d - n_valid * sol_d)
        colsum = jnp.sum(cache * valid_f, axis=0, keepdims=True)   # (1, Dp)
        n_valid = jnp.sum(valid_f)
        partial = max_ind * jnp.sum(w * (colsum - n_valid * sol))
        acc_ref[0] += partial
    else:
        diff = max_ind * (cache - sol)                             # (TP, Dp)
        rowsum = jnp.sum(diff * w, axis=1, keepdims=True)          # (TP, 1)
        if is_relu:
            partial = jnp.sum(jnp.maximum(rowsum, 0.0) * valid_f)
            acc_ref[0] += partial
        else:  # max variants (7-9)
            masked = jnp.where(valid, rowsum, jnp.float32(-jnp.inf))
            acc_ref[0] = jnp.maximum(acc_ref[0], jnp.max(masked))

    # --- finalize ------------------------------------------------------------
    @pl.when(i == n - 1)
    def _finalize():
        out_ref[0] = acc_ref[0]


def nce_loss(y_pred, y_train, sol_train, cache_sols, *,
             variant, maximize=True, tile_p=None):
    """Pallas implementation of NCE_Loss.forward (returns a scalar)."""
    if variant not in (1, 2, 3, 4, 5, 6, 7, 8, 9, 10):
        raise ValueError(f"unsupported variant {variant}")
    max_ind = 1.0 if maximize else -1.0

    # mirror: y_pred_i = y_pred_i.view(*y_train_i.shape)
    y_pred = jnp.reshape(y_pred, y_train.shape)

    P, D = cache_sols.shape
    Dp = _round_up(D, 128)                        # lane-dense last dim

    # tile size along the cache axis (multiple of 8 sublanes, VMEM-friendly)
    cache_itemsize = jnp.dtype(cache_sols.dtype).itemsize
    if tile_p is None:
        budget = 8 * 1024 * 1024                  # per double-buffer pair
        tp = max(8, budget // (2 * Dp * cache_itemsize))
        tp = min(tp, 1024)
    else:
        tp = max(8, tile_p)
    tp = _round_up(tp, 8)
    tp = min(tp, _round_up(P, 8))
    Pp = _round_up(P, tp)
    n_tiles = Pp // tp

    # zero-pad to padded shapes (zeros do not change the loss; padded rows are
    # additionally masked in the kernel for the ReLU / max reductions)
    def pad2(a, rows, cols):
        return jnp.pad(a, ((0, rows - a.shape[0]), (0, cols - a.shape[1])))

    y_pred_p = pad2(y_pred.astype(jnp.float32), 1, Dp)
    y_train_p = pad2(y_train.astype(jnp.float32), 1, Dp)
    sol_p = pad2(sol_train.astype(jnp.float32), 1, Dp)
    cache_p = pad2(cache_sols, Pp, Dp)            # keep storage dtype (e.g. int8)

    kernel = functools.partial(_nce_kernel, variant=variant, max_ind=max_ind,
                               tp=tp, p_actual=P)

    cost = pl.CostEstimate(
        flops=2 * Pp * Dp,
        transcendentals=0,
        bytes_accessed=Pp * Dp * cache_itemsize + 3 * Dp * 4 + 4,
    )

    out = pl.pallas_call(
        kernel,
        out_shape=jax.ShapeDtypeStruct((1,), jnp.float32),
        grid_spec=pltpu.PrefetchScalarGridSpec(
            num_scalar_prefetch=0,
            grid=(n_tiles,),
            in_specs=[
                pl.BlockSpec((1, Dp), lambda i: (0, 0)),    # y_pred  (resident)
                pl.BlockSpec((1, Dp), lambda i: (0, 0)),    # y_train (resident)
                pl.BlockSpec((1, Dp), lambda i: (0, 0)),    # sol     (resident)
                pl.BlockSpec((tp, Dp), lambda i: (i, 0)),   # cache tile (streamed)
            ],
            out_specs=pl.BlockSpec(memory_space=pltpu.SMEM),
            scratch_shapes=[
                pltpu.SMEM((1,), jnp.float32),              # running sum / max
                pltpu.VMEM((1, Dp), jnp.float32),           # hoisted weight w
            ],
        ),
        compiler_params=pltpu.CompilerParams(
            dimension_semantics=("arbitrary",),             # reduction axis
            vmem_limit_bytes=32 * 1024 * 1024,
        ),
        cost_estimate=cost,
    )(y_pred_p, y_train_p, sol_p, cache_p)
    return out[0]


def _nce_loss_ref(y_pred, y_train, sol_train, cache_sols, *,
                  variant, maximize=True):
    """Pure-JAX reference mirroring the PyTorch module exactly."""
    max_ind = 1.0 if maximize else -1.0
    y_pred = jnp.reshape(y_pred, y_train.shape).astype(jnp.float32)
    y_train = y_train.astype(jnp.float32)
    sol_train = sol_train.astype(jnp.float32)
    cache = cache_sols.astype(jnp.float32)
    diff = max_ind * (cache - sol_train)
    if variant in (1, 4, 7):
        w = y_pred
    elif variant in (2, 5, 8):
        w = y_pred - y_train
    elif variant in (3, 6, 9):
        w = 2.0 * y_pred - y_train
    else:  # 10
        w = y_train - y_pred
    prod = diff * w
    if variant in (1, 2, 3):
        return jnp.sum(prod)
    if variant in (4, 5, 6, 10):
        return jnp.sum(jax.nn.relu(jnp.sum(prod, axis=1)))
    return jnp.max(jnp.sum(prod, axis=1))


if __name__ == "__main__":
    key = jax.random.PRNGKey(0)
    k1, k2, k3, k4, k5 = jax.random.split(key, 5)

    # small shapes consistent with the module: D decision variables,
    # P cached feasible solutions (binary, stored as int8 to cut HBM bytes).
    D = 32
    P_small, P_big = 8, 20

    y_train = jax.random.normal(k1, (1, D), dtype=jnp.float32)
    y_pred = jax.random.normal(k2, (D,), dtype=jnp.float32)   # flat; view()'d
    sol_train = (jax.random.uniform(k3, (1, D)) > 0.5).astype(jnp.float32)
    cache_small = (jax.random.uniform(k4, (P_small, D)) > 0.5).astype(jnp.int8)
    cache_big = (jax.random.uniform(k5, (P_big, D)) > 0.5).astype(jnp.int8)

    failures = []
    for variant in range(1, 11):
        for maximize in (True, False):
            # single-tile path
            out = nce_loss(y_pred, y_train, sol_train, cache_small,
                           variant=variant, maximize=maximize)
            out = jax.block_until_ready(out)
            ref = _nce_loss_ref(y_pred, y_train, sol_train, cache_small,
                                variant=variant, maximize=maximize)
            if not jnp.allclose(out, ref, atol=1e-4, rtol=1e-4):
                failures.append((variant, maximize, "small", float(out), float(ref)))

            # multi-tile path with a partial last tile (exercises masking)
            out2 = nce_loss(y_pred, y_train, sol_train, cache_big,
                            variant=variant, maximize=maximize, tile_p=8)
            out2 = jax.block_until_ready(out2)
            ref2 = _nce_loss_ref(y_pred, y_train, sol_train, cache_big,
                                 variant=variant, maximize=maximize)
            if not jnp.allclose(out2, ref2, atol=1e-4, rtol=1e-4):
                failures.append((variant, maximize, "big", float(out2), float(ref2)))

    if failures:
        raise RuntimeError(f"mismatches: {failures}")
    print("KERNEL_OK")
</pallas_src>

<mosaic_0001>
module attributes {stable_mosaic.version = 11 : i64} {
  func.func @_nce_kernel(%arg0: i32, %arg1: memref<1x128xf32, #tpu.memory_space<vmem>>, %arg2: memref<1x128xf32, #tpu.memory_space<vmem>>, %arg3: memref<1x128xf32, #tpu.memory_space<vmem>>, %arg4: memref<8x128xi8, #tpu.memory_space<vmem>>, %arg5: memref<1xf32, #tpu.memory_space<smem>>, %arg6: memref<1xf32, #tpu.memory_space<smem>>, %arg7: memref<1x128xf32, #tpu.memory_space<vmem>>) attributes {dimension_semantics = [#tpu.dimension_semantics<arbitrary>], iteration_bounds = array<i64: 1>, scalar_prefetch = 0 : i64, scratch_operands = 2 : i64, tpu.core_type = #tpu.core_type<tc>, window_params = [{pipeline_mode = #tpu.pipeline_mode<synchronous>, transform_indices = @transform_0, window_bounds = array<i64: 1, 128>}, {pipeline_mode = #tpu.pipeline_mode<synchronous>, transform_indices = @transform_1, window_bounds = array<i64: 1, 128>}, {pipeline_mode = #tpu.pipeline_mode<synchronous>, transform_indices = @transform_2, window_bounds = array<i64: 1, 128>}, {transform_indices = @transform_3, window_bounds = array<i64: 8, 128>}, {transform_indices = @transform_4, window_bounds = array<i64: 1>}]} {
    %c0_i32 = arith.constant 0 : i32
    %0 = arith.cmpi eq, %arg0, %c0_i32 : i32
    %1 = arith.extui %0 : i1 to i32
    %c0_i32_0 = arith.constant 0 : i32
    %2 = arith.cmpi ne, %1, %c0_i32_0 : i32
    scf.if %2 {
      %c0_14 = arith.constant 0 : index
      %c0_15 = arith.constant 0 : index
      %38 = vector.load %arg1[%c0_14, %c0_15] : memref<1x128xf32, #tpu.memory_space<vmem>>, vector<1x128xf32>
      %c0_16 = arith.constant 0 : index
      %c0_17 = arith.constant 0 : index
      %39 = vector.load %arg7[%c0_16, %c0_17] : memref<1x128xf32, #tpu.memory_space<vmem>>, vector<1x128xf32>
      tpu.vector_store %arg7[%c0_16, %c0_17], %38 {strides = array<i32>} : memref<1x128xf32, #tpu.memory_space<vmem>>, vector<1x128xf32>,
      %cst_18 = arith.constant 0.000000e+00 : f32
      %c0_19 = arith.constant 0 : index
      %40 = memref.load %arg6[%c0_19] : memref<1xf32, #tpu.memory_space<smem>>
      memref.store %cst_18, %arg6[%c0_19] : memref<1xf32, #tpu.memory_space<smem>>
    } else {
    }
    %c0 = arith.constant 0 : index
    %c0_1 = arith.constant 0 : index
    %3 = vector.load %arg7[%c0, %c0_1] : memref<1x128xf32, #tpu.memory_space<vmem>>, vector<1x128xf32>
    %c0_2 = arith.constant 0 : index
    %c0_3 = arith.constant 0 : index
    %4 = vector.load %arg3[%c0_2, %c0_3] : memref<1x128xf32, #tpu.memory_space<vmem>>, vector<1x128xf32>
    %c0_4 = arith.constant 0 : index
    %c0_5 = arith.constant 0 : index
    %5 = vector.load %arg4[%c0_4, %c0_5] : memref<8x128xi8, #tpu.memory_space<vmem>>, vector<8x128xi8>
    %6 = arith.sitofp %5 : vector<8x128xi8> to vector<8x128xf32>
    %c8_i32 = arith.constant 8 : i32
    %7 = arith.muli %arg0, %c8_i32 : i32
    %8 = tpu.iota {dimensions = array<i32: 0>} : vector<8x1xi32>
    %9 = vector.broadcast %7 : i32 to vector<8x1xi32>
    %10 = arith.addi %9, %8 : vector<8x1xi32>
    %c8_i32_6 = arith.constant 8 : i32
    %11 = vector.broadcast %c8_i32_6 : i32 to vector<8x1xi32>
    %12 = arith.cmpi slt, %10, %11 : vector<8x1xi32>
    %13 = arith.extui %12 : vector<8x1xi1> to vector<8x1xi32>
    %14 = arith.sitofp %13 : vector<8x1xi32> to vector<8x1xf32>
    %15 = vector.broadcast %14 : vector<8x1xf32> to vector<8x128xf32>
    %16 = arith.mulf %6, %15 : vector<8x128xf32>
    %cst = arith.constant dense<0.000000e+00> : vector<128xf32>
    %17 = vector.multi_reduction <add>, %16, %cst [0] : vector<8x128xf32> to vector<128xf32>
    %18 = vector.shape_cast %17 : vector<128xf32> to vector<1x128xf32>
    %19 = vector.shape_cast %14 : vector<8x1xf32> to vector<1x8x1xf32>
    %cst_7 = arith.constant dense<0.000000e+00> : vector<1xf32>
    %20 = vector.multi_reduction <add>, %19, %cst_7 [1, 2] : vector<1x8x1xf32> to vector<1xf32>
    %21 = vector.shape_cast %20 : vector<1xf32> to vector<1x1x1xf32>
    %22 = vector.extract %21[0, 0, 0] : f32 from vector<1x1x1xf32>
    %23 = vector.broadcast %22 : f32 to vector<1x128xf32>
    %24 = arith.mulf %23, %4 : vector<1x128xf32>
    %25 = arith.subf %18, %24 : vector<1x128xf32>
    %26 = arith.mulf %3, %25 : vector<1x128xf32>
    %27 = vector.shape_cast %26 : vector<1x128xf32> to vector<1x1x128xf32>
    %cst_8 = arith.constant dense<0.000000e+00> : vector<1xf32>
    %28 = vector.multi_reduction <add>, %27, %cst_8 [1, 2] : vector<1x1x128xf32> to vector<1xf32>
    %29 = vector.shape_cast %28 : vector<1xf32> to vector<1x1x1xf32>
    %30 = vector.extract %29[0, 0, 0] : f32 from vector<1x1x1xf32>
    %cst_9 = arith.constant 1.000000e+00 : f32
    %31 = arith.mulf %cst_9, %30 : f32
    %c0_10 = arith.constant 0 : index
    %32 = memref.load %arg6[%c0_10] : memref<1xf32, #tpu.memory_space<smem>>
    %33 = arith.addf %32, %31 : f32
    %c0_11 = arith.constant 0 : index
    %34 = memref.load %arg6[%c0_11] : memref<1xf32, #tpu.memory_space<smem>>
    memref.store %33, %arg6[%c0_11] : memref<1xf32, #tpu.memory_space<smem>>
    %c0_i32_12 = arith.constant 0 : i32
    %35 = arith.cmpi eq, %arg0, %c0_i32_12 : i32
    %36 = arith.extui %35 : i1 to i32
    %c0_i32_13 = arith.constant 0 : i32
    %37 = arith.cmpi ne, %36, %c0_i32_13 : i32
    scf.if %37 {
      %c0_14 = arith.constant 0 : index
      %38 = memref.load %arg6[%c0_14] : memref<1xf32, #tpu.memory_space<smem>>
      %c0_15 = arith.constant 0 : index
      %39 = memref.load %arg5[%c0_15] : memref<1xf32, #tpu.memory_space<smem>>
      memref.store %38, %arg5[%c0_15] : memref<1xf32, #tpu.memory_space<smem>>
    } else {
    }
    return
  }
  func.func @transform_0(%arg0: i32) -> (i32, i32) {
    %c0_i32 = arith.constant 0 : i32
    %c0_i32_0 = arith.constant 0 : i32
    %c0_i32_1 = arith.constant 0 : i32
    return %c0_i32, %c0_i32_0 : i32, i32
  }
  func.func @transform_1(%arg0: i32) -> (i32, i32) {
    %c0_i32 = arith.constant 0 : i32
    %c0_i32_0 = arith.constant 0 : i32
    %c0_i32_1 = arith.constant 0 : i32
    return %c0_i32, %c0_i32_0 : i32, i32
  }
  func.func @transform_2(%arg0: i32) -> (i32, i32) {
    %c0_i32 = arith.constant 0 : i32
    %c0_i32_0 = arith.constant 0 : i32
    %c0_i32_1 = arith.constant 0 : i32
    return %c0_i32, %c0_i32_0 : i32, i32
  }
  func.func @transform_3(%arg0: i32) -> (i32, i32) {
    %c0_i32 = arith.constant 0 : i32
    %c0_i32_0 = arith.constant 0 : i32
    return %arg0, %c0_i32 : i32, i32
  }
  func.func @transform_4(%arg0: i32) -> i32 {
    %c0_i32 = arith.constant 0 : i32
    %c0_i32_0 = arith.constant 0 : i32
    return %c0_i32 : i32
  }
}

</mosaic_0001>

<bundles_post_ra>
// kernel: tpu_custom_call.1
= control target key start
LH: loop header
LB: loop body
LE: loop exit
PB: predicated region body
PF: predicated region fallthrough
CT: control target
= control target key end

     0   :  { %9 = vsyncpa [#allocation5], 0  ;;  %s224_s0 = inlined_call_operand.hbm [shape: f32[1,128], index: 0, kind: input, shape index: {}]   ;;  %s225_s1 = inlined_call_operand.vmem [shape: f32[1,128], index: 1, kind: input, shape index: {}]   ;;  %s226_s2 = inlined_call_operand.hbm [shape: f32[1,128], index: 2, kind: input, shape index: {}]   ;;  %s227_s3 = inlined_call_operand.vmem [shape: s8[8,128], index: 3, kind: input, shape index: {}]   ;;  %s228_s4 = inlined_call_operand.hbm [shape: f32[1], index: 4, kind: output, shape index: {}]  }
   0x1   :  { %10 = vsyncpa [#allocation8], 0 }
   0x2   :  { %11 = vsyncpa [#allocation6], 0  ;;  %s183_s15 = smov [#allocation4]   ;;  %s184_s17 = smov [#allocation7]  }
   0x3   :  { %s18_s16 = sshll.u32 %s183_s15, 4  ;;  %s30_s18 = sshll.u32 %s184_s17, 4  ;;  %s19_s16 = int_to_ptr.vmem [resolvable:$true] %s18_s16  ;;  %s31_s18 = int_to_ptr.vmem [resolvable:$true] %s30_s18 }
   0x4   :  { %s137_s19 = scalar_lea.vmem %s19_s16, 16  ;;  %s141_s1 = scalar_lea.vmem %s19_s16, 32 }
   0x5   :  { %p138_p0 = scmp.ne.s32.totalorder %s19_s16, %s137_s19  ;;  %p142_p1 = scmp.lt.s32.totalorder %s19_s16, %s19_s16 }
   0x6   :  { %p143_p2 = scmp.lt.s32.totalorder %s141_s1, %s137_s19 }
   0x8   :  { %p144_p3 = por %p143_p2, %p142_p1 }
   0xa   :  { %p145_p4 = pnand %p144_p3, %p138_p0 }
   0xc   :  { %148 = shalt.err (!%p145_p4)
}
   0xd   :  { %21 = dma.hbm_to_vmem [thread:$0]  %s224_s0, 16, %s19_s16, [#allocation5]  }
   0xe   :  { %s157_s22 = scalar_lea.vmem %s31_s18, 16  ;;  %s161_s23 = scalar_lea.vmem %s31_s18, 32 }
   0xf   :  { %p158_p5 = scmp.ne.s32.totalorder %s31_s18, %s157_s22  ;;  %p162_p6 = scmp.lt.s32.totalorder %s31_s18, %s31_s18 }
  0x10   :  { %p163_p7 = scmp.lt.s32.totalorder %s161_s23, %s157_s22 }
  0x12   :  { %p164_p8 = por %p163_p7, %p162_p6 }
  0x14   :  { %p165_p9 = pnand %p164_p8, %p158_p5 }
  0x16   :  { %168 = shalt.err (!%p165_p9)
}
  0x17   :  { %33 = dma.hbm_to_vmem [thread:$0]  %s226_s2, 16, %s31_s18, [#allocation8]  }
  0x18   :  { %177 = dma.done.wait [#allocation5], 16  }
  0x19   :  { %178 = vsyncadd [#allocation5], 4294967280  ;;  %vm70_vm0 = vcmask 7168  }
  0x1a   :  { %179 = dma.done.wait [#allocation8], 16  }
  0x1b   :  { %180 = vsyncadd [#allocation8], 4294967280  ;;  %v185_v0 = vmov 0.0   ;;  %v46_v2 = vld [vmem:[#allocation4] sm:$0x1]  ;;  %vm85_vm1 = vcmask 1040384  }
  0x1c   :  { %v71_v1 = vsel %vm70_vm0, 1.0, %v185_v0  ;;  %47 = vst [vmem:[#allocation3] sm:$0x1] %v46_v2  ;;  %v52_v10 = vld [vmem:[%s227_s3] sm:$0x3]  ;;  %s186_s27 = smov [#allocation9]  }
  0x1d   :  { %72 = vadd.xlane.f32.xlu0 %v71_v1  ;;  %v53_v11 = vunpack.c.0.s8 %v52_v10  ;;  %v51_v18 = vld [vmem:[#allocation7] sm:$0x1] }
  0x1f   :  { %v54_v12 = vcvt.s32.f32 %v53_v11 }
  0x21   :  { %v64_v13 = vrot.slane %v54_v12, 4 }
  0x23   :  { %v65_v14 = vadd.f32 %v64_v13, %v54_v12  ;;  %v50_v22 = vld [vmem:[#allocation3] sm:$0x1] }
  0x25   :  { %v66_v15 = vrot.slane %v65_v14, 2 }
  0x27   :  { %v67_v16 = vadd.f32 %v66_v15, %v65_v14 }
  0x29   :  { %v68_v17 = vrot.slane %v67_v16, 1 }
  0x2b   :  { %v69_v19 = vadd.f32 %v68_v17, %v67_v16 }
  0xa6   :  { %v73_v3 = vpop.xlane.xlu0 %72 }
  0xa7   :  { %v74_v4 = vrot.slane %v73_v3, 4 }
  0xa9   :  { %v75_v5 = vadd.f32 %v74_v4, %v73_v3 }
  0xab   :  { %v76_v6 = vrot.slane %v75_v5, 2 }
  0xad   :  { %v77_v7 = vadd.f32 %v76_v6, %v75_v5 }
  0xaf   :  { %v78_v8 = vrot.slane %v77_v7, 1 }
  0xb1   :  { %v79_v9 = vadd.f32 %v78_v8, %v77_v7 }
  0xb3   :  { %121 = vpush %v79_v9 }
  0xe4   :  { %s122_s26 = spop %121 }
  0xe5   :  { %v81_v20 = vstv %s122_s26 }
  0xe6   :  { %v82_v21 = vmul.f32 %v81_v20, %v51_v18 }
  0xe8   :  { %v83_v23 = vsub.f32 %v69_v19, %v82_v21 }
  0xea   :  { %v84_v24 = vmul.f32 %v83_v23, %v50_v22 }
  0xec   :  { %v86_v25 = vsel %vm85_vm1, %v84_v24, 0.0 }
  0xed   :  { %87 = vadd.xlane.f32.xlu0 %v86_v25 }
 0x176   :  { %v88_v26 = vpop.xlane.xlu0 %87 }
 0x177   :  { %v89_v27 = vrot.slane %v88_v26, 4 }
 0x179   :  { %v90_v28 = vadd.f32 %v89_v27, %v88_v26 }
 0x17b   :  { %v91_v29 = vrot.slane %v90_v28, 2 }
 0x17d   :  { %v92_v30 = vadd.f32 %v91_v29, %v90_v28 }
 0x17f   :  { %v93_v31 = vrot.slane %v92_v30, 1 }
 0x181   :  { %v94_v32 = vadd.f32 %v93_v31, %v92_v30 }
 0x183   :  { %123 = vpush %v94_v32 }
 0x1b4   :  { %s124_s3 = spop %123 }
 0x1b5   :  { %105 = sst [smem:[#allocation9]] %s124_s3 }
 0x1b6   :  { %113 = dma.smem_to_hbm %s186_s27, 16, %s228_s4, [#allocation6]  }
 0x1b7   :  { %181 = dma.done.wait [#allocation6], 16  }
 0x1b8   :  { %182 = vsyncadd [#allocation6], 4294967280 }
 0x1b9   :  { %117 = sfence }
 0x1ba   :  { %118 = vsyncpa [#allocation5], 1 }
 0x1bb   :  { %119 = vsyncpa [#allocation8], 1 }
 0x1bc   :  { %120 = vsyncpa [#allocation6], 1 }

</bundles_post_ra>
